<compile_context>
chip_gen: v5e
topology: v5e:2x2
jax: 0.10.0
libtpu: 0.0.40
codegen_flags: <defaults>
</compile_context>

<pallas_src>
import jax
import jax.numpy as jnp
from jax.experimental import pallas as pl
from jax.experimental.pallas import tpu as pltpu

PAD_H = 128  # lane-padded hidden width (real hidden width is 20)


def _sigmoid_eup(z):
    # exp on the EUP, then approximate reciprocal (EUP vrcp) instead of an
    # exact f32 divide. Low-precision but plenty for this model (~1e-3).
    return pl.reciprocal(1.0 + jnp.exp(-z), approx=True)


def xor_mlp_kernel(x_ref, p_ref, o_ref):
    x = x_ref[...]          # (B, 2)   f32
    p = p_ref[...]          # (8, 128) f32 packed, zero-padded params (one DMA)

    w1_r0 = p[0:1, :]       # (1, 128) == w1[0, :] (pad lanes 0)
    w1_r1 = p[1:2, :]       # (1, 128) == w1[1, :] (pad lanes 0)
    b1 = p[2:3, :]          # (1, 128) (pad lanes 0)
    w2_t = p[3:4, :]        # (1, 128) == w2[:, 0]^T (pad lanes MUST be 0)
    b2 = p[4:5, 0:1]        # (1, 1)

    # Hidden layer on the VPU: (B,1)*(1,128) broadcasts, two FMAs, full vreg,
    # no MXU push/pop. Padded lanes give sigmoid(0)=0.5 but are zeroed by w2_t.
    h = _sigmoid_eup(x[:, 0:1] * w1_r0 + x[:, 1:2] * w1_r1 + b1)   # (B, 128)

    # Output layer: elementwise multiply + cross-lane reduce (XLU), then bias.
    y = jnp.sum(h * w2_t, axis=-1, keepdims=True) + b2             # (B, 1)

    o_ref[...] = _sigmoid_eup(y).astype(o_ref.dtype)


def xor_model_forward(x, params):
    """x: (B, 2) f32, params: (8, PAD_H) f32 packed. Returns (B, 1) f32."""
    B = x.shape[0]
    H = params.shape[1]
    return pl.pallas_call(
        xor_mlp_kernel,
        out_shape=jax.ShapeDtypeStruct((B, 1), jnp.float32),
        in_specs=[
            pl.BlockSpec(memory_space=pltpu.MemorySpace.VMEM),  # x, whole array
            pl.BlockSpec(memory_space=pltpu.MemorySpace.VMEM),  # packed params
        ],
        out_specs=pl.BlockSpec(memory_space=pltpu.MemorySpace.VMEM),
        cost_estimate=pl.CostEstimate(
            flops=6 * B * H,                      # 2 FMAs + bias + mul/reduce per lane
            transcendentals=B * H + B,            # hidden + output sigmoids
            bytes_accessed=(B * 2 + 8 * H + B) * 4,
        ),
    )(x, params)


def init_params(key):
    """Deterministic init mimicking torch.nn.Linear default (uniform +/- 1/sqrt(fan_in))."""
    k1, k2, k3, k4 = jax.random.split(key, 4)
    bound1 = 1.0 / jnp.sqrt(2.0)
    bound2 = 1.0 / jnp.sqrt(20.0)
    w1 = jax.random.uniform(k1, (2, 20), jnp.float32, -bound1, bound1)
    b1 = jax.random.uniform(k2, (1, 20), jnp.float32, -bound1, bound1)
    w2 = jax.random.uniform(k3, (20, 1), jnp.float32, -bound2, bound2)
    b2 = jax.random.uniform(k4, (1, 1), jnp.float32, -bound2, bound2)
    return w1, b1, w2, b2


def pack_params(w1, b1, w2, b2, pad_h=PAD_H):
    """Pack all weights/biases into one zero-padded (8, pad_h) f32 block (one DMA).

    Rows: 0-1 = w1, 2 = b1, 3 = w2^T (pad lanes must stay 0), 4 = b2, 5-7 = 0.
    """
    H = w1.shape[1]
    p = jnp.zeros((8, pad_h), jnp.float32)
    p = p.at[0:2, :H].set(w1)
    p = p.at[2, :H].set(b1.reshape(H))
    p = p.at[3, :H].set(w2.reshape(H))        # pad lanes remain exactly 0
    p = p.at[4, :].set(b2.reshape(()))        # kernel only reads [4, 0]
    return p


if __name__ == "__main__":
    key = jax.random.PRNGKey(0)
    w1, b1, w2, b2 = init_params(key)
    params = pack_params(w1, b1, w2, b2)

    # XOR truth-table input, same as the PyTorch script: shape (4, 2) float32.
    x = jnp.array([[0, 0], [0, 1], [1, 0], [1, 1]], dtype=jnp.float32)

    out = xor_model_forward(x, params)
    out = jax.block_until_ready(out)

    # Pure-JAX reference of the same forward pass (x @ W1 + b1 -> sig -> @ W2 + b2 -> sig).
    ref = jax.nn.sigmoid(jax.nn.sigmoid(x @ w1 + b1) @ w2 + b2)
    assert out.shape == (4, 1)
    # Looser tolerance: in-kernel sigmoid uses the EUP approximate reciprocal.
    assert jnp.allclose(out, ref, atol=2e-3), (out, ref)

    print("KERNEL_OK")
</pallas_src>

<mosaic_0001>
module attributes {stable_mosaic.version = 11 : i64} {
  func.func @xor_mlp_kernel(%arg0: memref<4x2xf32, #tpu.memory_space<vmem>>, %arg1: memref<8x128xf32, #tpu.memory_space<vmem>>, %arg2: memref<4x1xf32, #tpu.memory_space<vmem>>) attributes {dimension_semantics = [], scalar_prefetch = 0 : i64, scratch_operands = 0 : i64, tpu.core_type = #tpu.core_type<tc>} {
    %c0 = arith.constant 0 : index
    %c0_0 = arith.constant 0 : index
    %0 = vector.load %arg0[%c0, %c0_0] : memref<4x2xf32, #tpu.memory_space<vmem>>, vector<4x2xf32>
    %c0_1 = arith.constant 0 : index
    %c0_2 = arith.constant 0 : index
    %1 = vector.load %arg1[%c0_1, %c0_2] : memref<8x128xf32, #tpu.memory_space<vmem>>, vector<8x128xf32>
    %2 = vector.extract_strided_slice %1 {offsets = [0, 0], sizes = [1, 128], strides = [1, 1]} : vector<8x128xf32> to vector<1x128xf32>
    %3 = vector.extract_strided_slice %1 {offsets = [1, 0], sizes = [1, 128], strides = [1, 1]} : vector<8x128xf32> to vector<1x128xf32>
    %4 = vector.extract_strided_slice %1 {offsets = [2, 0], sizes = [1, 128], strides = [1, 1]} : vector<8x128xf32> to vector<1x128xf32>
    %5 = vector.extract_strided_slice %1 {offsets = [3, 0], sizes = [1, 128], strides = [1, 1]} : vector<8x128xf32> to vector<1x128xf32>
    %6 = vector.extract_strided_slice %1 {offsets = [4, 0], sizes = [1, 1], strides = [1, 1]} : vector<8x128xf32> to vector<1x1xf32>
    %7 = vector.extract_strided_slice %0 {offsets = [0, 0], sizes = [4, 1], strides = [1, 1]} : vector<4x2xf32> to vector<4x1xf32>
    %8 = vector.broadcast %7 : vector<4x1xf32> to vector<4x128xf32>
    %9 = vector.broadcast %2 : vector<1x128xf32> to vector<4x128xf32>
    %10 = arith.mulf %8, %9 : vector<4x128xf32>
    %11 = vector.extract_strided_slice %0 {offsets = [0, 1], sizes = [4, 1], strides = [1, 1]} : vector<4x2xf32> to vector<4x1xf32>
    %12 = vector.broadcast %11 : vector<4x1xf32> to vector<4x128xf32>
    %13 = vector.broadcast %3 : vector<1x128xf32> to vector<4x128xf32>
    %14 = arith.mulf %12, %13 : vector<4x128xf32>
    %15 = arith.addf %10, %14 : vector<4x128xf32>
    %16 = vector.broadcast %4 : vector<1x128xf32> to vector<4x128xf32>
    %17 = arith.addf %15, %16 : vector<4x128xf32>
    %cst = arith.constant 0.000000e+00 : f32
    %18 = vector.broadcast %cst : f32 to vector<4x128xf32>
    %19 = arith.subf %18, %17 : vector<4x128xf32>
    %20 = math.exp %19 : vector<4x128xf32>
    %cst_3 = arith.constant 1.000000e+00 : f32
    %21 = vector.broadcast %cst_3 : f32 to vector<4x128xf32>
    %22 = arith.addf %21, %20 : vector<4x128xf32>
    %23 = tpu.reciprocal %22 {approx = true} : vector<4x128xf32> -> vector<4x128xf32>
    %24 = vector.broadcast %5 : vector<1x128xf32> to vector<4x128xf32>
    %25 = arith.mulf %23, %24 : vector<4x128xf32>
    %cst_4 = arith.constant dense<0.000000e+00> : vector<4xf32>
    %26 = vector.multi_reduction <add>, %25, %cst_4 [1] : vector<4x128xf32> to vector<4xf32>
    %27 = vector.shape_cast %26 : vector<4xf32> to vector<4x1xf32>
    %28 = vector.broadcast %6 : vector<1x1xf32> to vector<4x1xf32>
    %29 = arith.addf %27, %28 : vector<4x1xf32>
    %cst_5 = arith.constant 0.000000e+00 : f32
    %30 = vector.broadcast %cst_5 : f32 to vector<4x1xf32>
    %31 = arith.subf %30, %29 : vector<4x1xf32>
    %32 = math.exp %31 : vector<4x1xf32>
    %cst_6 = arith.constant 1.000000e+00 : f32
    %33 = vector.broadcast %cst_6 : f32 to vector<4x1xf32>
    %34 = arith.addf %33, %32 : vector<4x1xf32>
    %35 = tpu.reciprocal %34 {approx = true} : vector<4x1xf32> -> vector<4x1xf32>
    %c0_7 = arith.constant 0 : index
    %c0_8 = arith.constant 0 : index
    %36 = vector.load %arg2[%c0_7, %c0_8] : memref<4x1xf32, #tpu.memory_space<vmem>>, vector<4x1xf32>
    tpu.vector_store %arg2[%c0_7, %c0_8], %35 {strides = array<i32>} : memref<4x1xf32, #tpu.memory_space<vmem>>, vector<4x1xf32>,
    return
  }
}

</mosaic_0001>

<bundles_post_ra>
// kernel: tpu_custom_call.1
= control target key start
LH: loop header
LB: loop body
LE: loop exit
PB: predicated region body
PF: predicated region fallthrough
CT: control target
= control target key end

     0   :  { %7 = vsyncpa [#allocation3], 0  ;;  %s107_s12 = smov [#allocation2]   ;;  %s134_s0 = inlined_call_operand.vmem [shape: f32[4,2], index: 0, kind: input, shape index: {}]   ;;  %s135_s1 = inlined_call_operand.hbm [shape: f32[8,128], index: 1, kind: input, shape index: {}]   ;;  %s136_s2 = inlined_call_operand.vmem [shape: f32[4,1], index: 2, kind: output, shape index: {}]  }
   0x1   :  { %s15_s11 = sshll.u32 %s135_s1, 4  ;;  %s17_s13 = sshll.u32 %s107_s12, 4  ;;  %s16_s11 = int_to_ptr.hbm [resolvable:$true] %s15_s11  ;;  %s18_s13 = int_to_ptr.vmem [resolvable:$true] %s17_s13 }
   0x2   :  { %20 = dma.hbm_to_vmem [thread:$0]  %s16_s11, 128, %s18_s13, [#allocation3]  }
   0x3   :  { %105 = dma.done.wait [#allocation3], 128  }
   0x4   :  { %106 = vsyncadd [#allocation3], 4294967168  ;;  %v108_v0 = vmov 0   ;;  %v25_v1 = vld [vmem:[%s134_s0] sm:$0xf]  ;;  %v109_v2 = vmov 1  }
   0x5   :  { %71 = vset.pattern.permute.xlu0 %v108_v0  ;;  %v26_v4 = vld [vmem:[#allocation2] sm:$0xff]  ;;  %vm50_vm0 = vcmask 1043456   ;;  %vm61_vm1 = vcmask 3072  }
   0x6   :  { %29 = vperm.xlu0 %71, %v25_v1   ;;  %v32_v5 = vperm.slane %v26_v4, 0  ;;  %v38_v6 = vperm.slane %v26_v4, 1  ;;  %v41_v9 = vperm.slane %v26_v4, 2  ;;  %v48_v17 = vperm.slane %v26_v4, 3 }
   0x7   :  { %v54_v21 = vperm.slane %v26_v4, 4 }
   0xe   :  { %72 = vset.pattern.permute.xlu0 %v109_v2 }
   0xf   :  { %35 = vperm.xlu0 %72, %v25_v1  }
  0x78   :  { %v30_v3 = vpop.permute.xlu0 %29 }
  0x79   :  { %v33_v8 = vmul.f32 %v32_v5, %v30_v3 }
  0x81   :  { %v36_v7 = vpop.permute.xlu0 %35 }
  0x82   :  { %v39_v10 = vmul.f32 %v38_v6, %v36_v7 }
  0x84   :  { %v40_v11 = vadd.f32 %v39_v10, %v33_v8 }
  0x86   :  { %v42_v12 = vadd.f32 %v41_v9, %v40_v11 }
  0x88   :  { %v43_v13 = vsub.f32 0.0, %v42_v12 }
  0x8a   :  { %v44_v14 = vmul.f32 1.442695, %v43_v13 }
  0x8c   :  { %73 = vpow2.f32 %v44_v14 }
  0x92   :  { %v74_v15 = vpop.eup %73 }
  0x93   :  { %v46_v16 = vadd.f32 1.0, %v74_v15 }
  0x95   :  { %75 = vrcp.f32 %v46_v16 }
  0x9b   :  { %v76_v18 = vpop.eup %75 }
  0x9c   :  { %v49_v19 = vmul.f32 %v76_v18, %v48_v17 }
  0x9e   :  { %v51_v20 = vsel %vm50_vm0, %v49_v19, 0.0 }
  0x9f   :  { %52 = vadd.xlane.f32.xlu1 %v51_v20 }
 0x112   :  { %v53_v22 = vpop.xlane.xlu1 %52 }
 0x113   :  { %v55_v23 = vadd.f32 %v54_v21, %v53_v22 }
 0x115   :  { %v56_v24 = vsub.f32 0.0, %v55_v23 }
 0x117   :  { %v57_v25 = vmul.f32 1.442695, %v56_v24 }
 0x119   :  { %77 = vpow2.f32 %v57_v25 }
 0x11f   :  { %v78_v26 = vpop.eup %77 }
 0x120   :  { %v59_v27 = vadd.f32 1.0, %v78_v26 }
 0x122   :  { %79 = vrcp.f32 %v59_v27 }
 0x128   :  { %v80_v28 = vpop.eup %79 }
 0x129   :  { %62 = vst.msk [vmem:[%s136_s2] sm:$0xf] %vm61_vm1, %v80_v28 }
 0x12a   :  { %67 = vsyncpa [#allocation3], 1 }

</bundles_post_ra>
